<compile_context>
chip_gen: v6e
topology: v6e:2x2x1
jax: 0.10.0
libtpu: 0.0.40
codegen_flags: <defaults>
</compile_context>

<pallas_src>
import functools

import jax
import jax.numpy as jnp
import numpy as np
from jax import lax
from jax.experimental import pallas as pl
from jax.experimental.pallas import tpu as pltpu

EPS = 1e-5
TM_MAX = 512                      # M-tile rows (sublane aligned, fits all gens)
TK_MAX = 512                      # contraction tile (bf16, 128-aligned)
VMEM_LIMIT = 48 * 1024 * 1024     # raise scoped VMEM above the 16/32 MiB default


def _round_up(x, m):
    return (x + m - 1) // m * m


def _matmul_tiles(M, K, Cpad):
    """(tm, tn, tk, Kp) for the im2col matmul."""
    tm = min(TM_MAX, _round_up(M, 8))
    tn = 256 if Cpad % 256 == 0 else 128      # 256-wide N fills the v6e/v7x MXU
    if K <= 2 * TK_MAX:
        Kp = _round_up(K, 128)                # lane-dense patch loads
        tk = Kp                               # single K step
    else:
        tk = TK_MAX
        Kp = _round_up(K, tk)
    return tm, tn, tk, Kp


def _apply_tile_n(Cpad):
    """Widest lane-dense channel tile (<=512) dividing Cpad for elementwise passes."""
    for tn in (512, 384, 256, 128):
        if Cpad % tn == 0:
            return tn
    return 128


# ---------------------------------------------------------------------------
# Pallas kernels
# ---------------------------------------------------------------------------
def _matmul_stats_kernel(p_ref, w_ref, y_ref, sum_ref, ssq_ref, acc_ref):
    """Accumulate one (tm, tn) tile of y = patches @ w (bf16 x bf16 -> f32 MXU)
    over the K grid axis.  On the last K step, emit the f32 tile plus this
    tile's per-channel partial sum / sum-of-squares for training-mode BN."""
    @pl.when(pl.program_id(2) == 0)
    def _():
        acc_ref[...] = jnp.zeros_like(acc_ref)

    acc_ref[...] += jnp.dot(p_ref[...], w_ref[...],
                            preferred_element_type=jnp.float32)

    @pl.when(pl.program_id(2) == pl.num_programs(2) - 1)
    def _():
        y = acc_ref[...]
        y_ref[...] = y
        sum_ref[...] = jnp.sum(y, axis=0, keepdims=True)[None]      # (1, 1, tn)
        ssq_ref[...] = jnp.sum(y * y, axis=0, keepdims=True)[None]  # (1, 1, tn)


def _scale_shift_kernel(y_ref, sc_ref, sh_ref, o_ref, *, relu):
    """BatchNorm applied as one FMA per element: y*scale + shift (+ ReLU)."""
    y = y_ref[...] * sc_ref[...] + sh_ref[...]
    if relu:
        y = jnp.maximum(y, 0.0)
    o_ref[...] = y.astype(o_ref.dtype)


def _scale_shift_add_relu_kernel(y_ref, sc_ref, sh_ref, r_ref, rsc_ref, rsh_ref,
                                 o_ref):
    """out = relu(bn2(y) + bn_shortcut(residual)) for one (tm, tn) tile."""
    out = (y_ref[...] * sc_ref[...] + sh_ref[...]
           + r_ref[...] * rsc_ref[...] + rsh_ref[...])
    o_ref[...] = jnp.maximum(out, 0.0).astype(o_ref.dtype)


# ---------------------------------------------------------------------------
# Kernel wrappers (tiled pallas_call sites)
# ---------------------------------------------------------------------------
def _matmul_bn_stats(patches, w, gamma_pad, beta_pad):
    """Tiled bf16 matmul y[:M] = patches @ w plus training-mode BN statistics.

    patches: (M, K) float.  w: (K, Cpad) float with Cpad % 128 == 0.
    Returns y (Mpad, Cpad) f32, BN scale/shift (1, Cpad) f32, and tm.
    """
    M, K = patches.shape
    Cpad = w.shape[1]
    tm, tn, tk, Kp = _matmul_tiles(M, K, Cpad)
    Mpad = _round_up(M, tm)
    gm, gn, gk = Mpad // tm, Cpad // tn, Kp // tk

    p = jnp.pad(patches.astype(jnp.bfloat16), ((0, Mpad - M), (0, Kp - K)))
    wb = jnp.pad(w.astype(jnp.bfloat16), ((0, Kp - K), (0, 0)))

    y, psum, pssq = pl.pallas_call(
        _matmul_stats_kernel,
        out_shape=(jax.ShapeDtypeStruct((Mpad, Cpad), jnp.float32),
                   jax.ShapeDtypeStruct((gm, 1, Cpad), jnp.float32),
                   jax.ShapeDtypeStruct((gm, 1, Cpad), jnp.float32)),
        grid=(gm, gn, gk),
        in_specs=[pl.BlockSpec((tm, tk), lambda i, j, k: (i, k)),
                  pl.BlockSpec((tk, tn), lambda i, j, k: (k, j))],
        out_specs=(pl.BlockSpec((tm, tn), lambda i, j, k: (i, j)),
                   pl.BlockSpec((1, 1, tn), lambda i, j, k: (i, 0, j)),
                   pl.BlockSpec((1, 1, tn), lambda i, j, k: (i, 0, j))),
        scratch_shapes=[pltpu.VMEM((tm, tn), jnp.float32)],
        compiler_params=pltpu.CompilerParams(
            dimension_semantics=("parallel", "parallel", "arbitrary"),
            vmem_limit_bytes=VMEM_LIMIT),
    )(p, wb)

    # Zero-padded rows/columns contribute nothing, so dividing by the true M
    # gives the exact biased (training-forward) statistics.  Tiny (1, Cpad) math.
    mean = jnp.sum(psum, axis=0) / M
    var = jnp.maximum(jnp.sum(pssq, axis=0) / M - mean * mean, 0.0)
    scale = gamma_pad[None, :] * lax.rsqrt(var + EPS)
    shift = beta_pad[None, :] - mean * scale
    return y, scale, shift, tm


def _apply_bn(y, scale, shift, tm, *, relu, out_dtype):
    Mpad, Cpad = y.shape
    tn = _apply_tile_n(Cpad)
    gm, gn = Mpad // tm, Cpad // tn
    kernel = functools.partial(_scale_shift_kernel, relu=relu)
    return pl.pallas_call(
        kernel,
        out_shape=jax.ShapeDtypeStruct((Mpad, Cpad), out_dtype),
        grid=(gm, gn),
        in_specs=[pl.BlockSpec((tm, tn), lambda i, j: (i, j)),
                  pl.BlockSpec((1, tn), lambda i, j: (0, j)),
                  pl.BlockSpec((1, tn), lambda i, j: (0, j))],
        out_specs=pl.BlockSpec((tm, tn), lambda i, j: (i, j)),
        compiler_params=pltpu.CompilerParams(
            dimension_semantics=("parallel", "parallel"),
            vmem_limit_bytes=VMEM_LIMIT),
    )(y, scale, shift)


def _apply_bn_add_relu(y, scale, shift, res, rscale, rshift, tm):
    Mpad, Cpad = y.shape
    tn = _apply_tile_n(Cpad)
    gm, gn = Mpad // tm, Cpad // tn
    return pl.pallas_call(
        _scale_shift_add_relu_kernel,
        out_shape=jax.ShapeDtypeStruct((Mpad, Cpad), jnp.float32),
        grid=(gm, gn),
        in_specs=[pl.BlockSpec((tm, tn), lambda i, j: (i, j)),
                  pl.BlockSpec((1, tn), lambda i, j: (0, j)),
                  pl.BlockSpec((1, tn), lambda i, j: (0, j)),
                  pl.BlockSpec((tm, tn), lambda i, j: (i, j)),
                  pl.BlockSpec((1, tn), lambda i, j: (0, j)),
                  pl.BlockSpec((1, tn), lambda i, j: (0, j))],
        out_specs=pl.BlockSpec((tm, tn), lambda i, j: (i, j)),
        compiler_params=pltpu.CompilerParams(
            dimension_semantics=("parallel", "parallel"),
            vmem_limit_bytes=VMEM_LIMIT),
    )(y, scale, shift, res, rscale, rshift)


# ---------------------------------------------------------------------------
# Glue: im2col (bf16), parameter init, block forward
# ---------------------------------------------------------------------------
def _im2col_3x3(x_nhwc, stride):
    """3x3, padding=1 patch extraction. Returns ((M, 9*C), Ho, Wo)."""
    N, H, W, C = x_nhwc.shape
    xp = jnp.pad(x_nhwc, ((0, 0), (1, 1), (1, 1), (0, 0)))
    Ho = (H + 2 - 3) // stride + 1
    Wo = (W + 2 - 3) // stride + 1
    taps = []
    for dh in range(3):
        for dw in range(3):
            taps.append(xp[:, dh:dh + (Ho - 1) * stride + 1:stride,
                            dw:dw + (Wo - 1) * stride + 1:stride, :])
    patches = jnp.concatenate(taps, axis=-1)            # (N, Ho, Wo, 9*C)
    return patches.reshape(N * Ho * Wo, 9 * C), Ho, Wo


def init_basic_block(key, in_planes, planes, stride):
    ks = jax.random.split(key, 8)

    def conv_w(k, kh, kw, cin, cout):
        bound = 1.0 / np.sqrt(kh * kw * cin)            # PyTorch conv default init
        return jax.random.uniform(k, (kh, kw, cin, cout), jnp.float32, -bound, bound)

    params = {
        "w1": conv_w(ks[0], 3, 3, in_planes, planes),
        "g1": 1.0 + 0.1 * jax.random.normal(ks[1], (planes,), jnp.float32),
        "b1": 0.1 * jax.random.normal(ks[2], (planes,), jnp.float32),
        "w2": conv_w(ks[3], 3, 3, planes, planes),
        "g2": 1.0 + 0.1 * jax.random.normal(ks[4], (planes,), jnp.float32),
        "b2": 0.1 * jax.random.normal(ks[5], (planes,), jnp.float32),
    }
    if stride != 1 or in_planes != planes:
        params["ws"] = conv_w(ks[6], 1, 1, in_planes, planes)[0, 0]   # (Cin, planes)
        gk, bk = jax.random.split(ks[7])
        params["gs"] = 1.0 + 0.1 * jax.random.normal(gk, (planes,), jnp.float32)
        params["bs"] = 0.1 * jax.random.normal(bk, (planes,), jnp.float32)
    return params


def basic_block_forward(params, x_nchw, stride):
    x = jnp.transpose(x_nchw, (0, 2, 3, 1)).astype(jnp.float32)   # NHWC
    N, H, W, Cin = x.shape
    planes = params["w1"].shape[-1]
    Cpad = _round_up(planes, 128)        # lane-dense output channels
    pad_c = Cpad - planes

    def pad_w(w2d):                      # (K, planes) -> (K, Cpad)
        return jnp.pad(w2d, ((0, 0), (0, pad_c)))

    def pad_v(v):                        # (planes,) -> (Cpad,); zeros keep pad lanes at 0
        return jnp.pad(v, (0, pad_c))

    x_bf = x.astype(jnp.bfloat16)        # conv operands stream in bf16

    # ---- conv1 (3x3, stride) -> bn1 -> relu --------------------------------
    p1, Ho, Wo = _im2col_3x3(x_bf, stride)
    M = N * Ho * Wo
    y1, sc1, sh1, tm = _matmul_bn_stats(
        p1, pad_w(params["w1"].reshape(9 * Cin, planes)),
        pad_v(params["g1"]), pad_v(params["b1"]))
    a1 = _apply_bn(y1, sc1, sh1, tm, relu=True, out_dtype=jnp.bfloat16)
    a1 = a1[:M, :planes].reshape(N, Ho, Wo, planes)

    # ---- shortcut: identity OR 1x1 conv (stride) + bn ----------------------
    if stride != 1 or Cin != planes:
        xs = x_bf[:, ::stride, ::stride, :].reshape(M, Cin)
        res, rsc, rsh, _ = _matmul_bn_stats(
            xs, pad_w(params["ws"]), pad_v(params["gs"]), pad_v(params["bs"]))
    else:
        Mpad = _round_up(M, tm)
        res = jnp.pad(x.reshape(M, Cin), ((0, Mpad - M), (0, pad_c)))
        rsc = jnp.ones((1, Cpad), jnp.float32)
        rsh = jnp.zeros((1, Cpad), jnp.float32)

    # ---- conv2 (3x3, stride 1) -> bn2 -> (+ shortcut) -> relu --------------
    p2, _, _ = _im2col_3x3(a1, 1)
    y2, sc2, sh2, tm2 = _matmul_bn_stats(
        p2, pad_w(params["w2"].reshape(9 * planes, planes)),
        pad_v(params["g2"]), pad_v(params["b2"]))
    assert res.shape == y2.shape
    out = _apply_bn_add_relu(y2, sc2, sh2, res, rsc, rsh, tm2)
    out = out[:M, :planes].reshape(N, Ho, Wo, planes)
    return jnp.transpose(out, (0, 3, 1, 2))              # back to NCHW


# ---------------------------------------------------------------------------
# Pure-JAX reference (mirrors the kernel's bf16 MXU feeding, f32 accumulation)
# ---------------------------------------------------------------------------
def reference_forward(params, x_nchw, stride):
    def conv(x, w, s, pad):
        return lax.conv_general_dilated(
            x.astype(jnp.bfloat16), w.astype(jnp.bfloat16),
            window_strides=(s, s), padding=[(pad, pad), (pad, pad)],
            dimension_numbers=("NCHW", "HWIO", "NCHW"),
            preferred_element_type=jnp.float32)

    def bn(x, g, b):
        mean = jnp.mean(x, axis=(0, 2, 3), keepdims=True)
        var = jnp.mean((x - mean) ** 2, axis=(0, 2, 3), keepdims=True)
        return ((x - mean) * lax.rsqrt(var + EPS) * g[None, :, None, None]
                + b[None, :, None, None])

    out = jax.nn.relu(bn(conv(x_nchw, params["w1"], stride, 1),
                         params["g1"], params["b1"]))
    out = bn(conv(out, params["w2"], 1, 1), params["g2"], params["b2"])
    if "ws" in params:
        sc = bn(conv(x_nchw, params["ws"][None, None], stride, 0),
                params["gs"], params["bs"])
    else:
        sc = x_nchw
    return jax.nn.relu(out + sc)


if __name__ == "__main__":
    key = jax.random.PRNGKey(0)
    kx, kp1, kp2 = jax.random.split(key, 3)

    fwd = jax.jit(basic_block_forward, static_argnums=2)

    # Case 1: downsample block (stride 2, channel-expanding 1x1 shortcut).
    in_planes, planes, stride = 4, 8, 2
    x = jax.random.normal(kx, (2, in_planes, 16, 16), jnp.float32)
    params = init_basic_block(kp1, in_planes, planes, stride)
    out = jax.block_until_ready(fwd(params, x, stride))
    ref = jax.block_until_ready(reference_forward(params, x, stride))
    assert out.shape == (2, planes, 8, 8)
    np.testing.assert_allclose(np.asarray(out), np.asarray(ref), rtol=5e-3, atol=5e-3)

    # Case 2: identity-shortcut block (stride 1, same channels).
    x2 = jax.random.normal(kx, (2, planes, 16, 16), jnp.float32)
    params_id = init_basic_block(kp2, planes, planes, 1)
    out2 = jax.block_until_ready(fwd(params_id, x2, 1))
    ref2 = jax.block_until_ready(reference_forward(params_id, x2, 1))
    assert out2.shape == (2, planes, 16, 16)
    np.testing.assert_allclose(np.asarray(out2), np.asarray(ref2), rtol=5e-3, atol=5e-3)

    print("KERNEL_OK")
</pallas_src>

<mosaic_0001>
module attributes {stable_mosaic.version = 11 : i64} {
  func.func @_matmul_stats_kernel(%arg0: i32, %arg1: i32, %arg2: i32, %arg3: memref<128x128xbf16, #tpu.memory_space<vmem>>, %arg4: memref<128x128xbf16, #tpu.memory_space<vmem>>, %arg5: memref<128x128xf32, #tpu.memory_space<vmem>>, %arg6: memref<1x1x128xf32, #tpu.memory_space<vmem>>, %arg7: memref<1x1x128xf32, #tpu.memory_space<vmem>>, %arg8: memref<128x128xf32, #tpu.memory_space<vmem>>) attributes {dimension_semantics = [#tpu.dimension_semantics<parallel>, #tpu.dimension_semantics<parallel>, #tpu.dimension_semantics<arbitrary>], iteration_bounds = array<i64: 1, 1, 1>, scalar_prefetch = 0 : i64, scratch_operands = 1 : i64, tpu.core_type = #tpu.core_type<tc>, window_params = [{transform_indices = @transform_0, window_bounds = array<i64: 128, 128>}, {transform_indices = @transform_1, window_bounds = array<i64: 128, 128>}, {transform_indices = @transform_2, window_bounds = array<i64: 128, 128>}, {transform_indices = @transform_3, window_bounds = array<i64: 1, 1, 128>}, {transform_indices = @transform_4, window_bounds = array<i64: 1, 1, 128>}]} {
    %c0_i32 = arith.constant 0 : i32
    %0 = arith.cmpi eq, %arg2, %c0_i32 : i32
    %1 = arith.extui %0 : i1 to i32
    %c0_i32_0 = arith.constant 0 : i32
    %2 = arith.cmpi ne, %1, %c0_i32_0 : i32
    scf.if %2 {
      %cst_10 = arith.constant 0.000000e+00 : f32
      %12 = vector.broadcast %cst_10 : f32 to vector<128x128xf32>
      %c0_11 = arith.constant 0 : index
      %c0_12 = arith.constant 0 : index
      %13 = vector.load %arg8[%c0_11, %c0_12] : memref<128x128xf32, #tpu.memory_space<vmem>>, vector<128x128xf32>
      tpu.vector_store %arg8[%c0_11, %c0_12], %12 {strides = array<i32>} : memref<128x128xf32, #tpu.memory_space<vmem>>, vector<128x128xf32>,
    } else {
    }
    %c0 = arith.constant 0 : index
    %c0_1 = arith.constant 0 : index
    %3 = vector.load %arg8[%c0, %c0_1] : memref<128x128xf32, #tpu.memory_space<vmem>>, vector<128x128xf32>
    %c0_2 = arith.constant 0 : index
    %c0_3 = arith.constant 0 : index
    %4 = vector.load %arg3[%c0_2, %c0_3] : memref<128x128xbf16, #tpu.memory_space<vmem>>, vector<128x128xbf16>
    %c0_4 = arith.constant 0 : index
    %c0_5 = arith.constant 0 : index
    %5 = vector.load %arg4[%c0_4, %c0_5] : memref<128x128xbf16, #tpu.memory_space<vmem>>, vector<128x128xbf16>
    %cst = arith.constant dense<0.000000e+00> : vector<128x128xf32>
    %6 = tpu.matmul %4, %5, %cst {dimension_numbers = #tpu.dot_dimension_numbers<[1], [0], [0], [1], [0, 0, 1, 1], [], []>} : vector<128x128xbf16>, vector<128x128xbf16>, vector<128x128xf32> -> vector<128x128xf32>
    %7 = arith.addf %3, %6 : vector<128x128xf32>
    %c0_6 = arith.constant 0 : index
    %c0_7 = arith.constant 0 : index
    %8 = vector.load %arg8[%c0_6, %c0_7] : memref<128x128xf32, #tpu.memory_space<vmem>>, vector<128x128xf32>
    tpu.vector_store %arg8[%c0_6, %c0_7], %7 {strides = array<i32>} : memref<128x128xf32, #tpu.memory_space<vmem>>, vector<128x128xf32>,
    %c0_i32_8 = arith.constant 0 : i32
    %9 = arith.cmpi eq, %arg2, %c0_i32_8 : i32
    %10 = arith.extui %9 : i1 to i32
    %c0_i32_9 = arith.constant 0 : i32
    %11 = arith.cmpi ne, %10, %c0_i32_9 : i32
    scf.if %11 {
      %c0_10 = arith.constant 0 : index
      %c0_11 = arith.constant 0 : index
      %12 = vector.load %arg8[%c0_10, %c0_11] : memref<128x128xf32, #tpu.memory_space<vmem>>, vector<128x128xf32>
      %c0_12 = arith.constant 0 : index
      %c0_13 = arith.constant 0 : index
      %13 = vector.load %arg5[%c0_12, %c0_13] : memref<128x128xf32, #tpu.memory_space<vmem>>, vector<128x128xf32>
      tpu.vector_store %arg5[%c0_12, %c0_13], %12 {strides = array<i32>} : memref<128x128xf32, #tpu.memory_space<vmem>>, vector<128x128xf32>,
      %cst_14 = arith.constant dense<0.000000e+00> : vector<128xf32>
      %14 = vector.multi_reduction <add>, %12, %cst_14 [0] : vector<128x128xf32> to vector<128xf32>
      %15 = vector.shape_cast %14 : vector<128xf32> to vector<1x128xf32>
      %16 = vector.shape_cast %15 : vector<1x128xf32> to vector<1x1x128xf32>
      %c0_15 = arith.constant 0 : index
      %c0_16 = arith.constant 0 : index
      %c0_17 = arith.constant 0 : index
      %17 = vector.load %arg6[%c0_15, %c0_16, %c0_17] : memref<1x1x128xf32, #tpu.memory_space<vmem>>, vector<1x1x128xf32>
      tpu.vector_store %arg6[%c0_15, %c0_16, %c0_17], %16 {strides = array<i32>} : memref<1x1x128xf32, #tpu.memory_space<vmem>>, vector<1x1x128xf32>,
      %18 = arith.mulf %12, %12 : vector<128x128xf32>
      %cst_18 = arith.constant dense<0.000000e+00> : vector<128xf32>
      %19 = vector.multi_reduction <add>, %18, %cst_18 [0] : vector<128x128xf32> to vector<128xf32>
      %20 = vector.shape_cast %19 : vector<128xf32> to vector<1x128xf32>
      %21 = vector.shape_cast %20 : vector<1x128xf32> to vector<1x1x128xf32>
      %c0_19 = arith.constant 0 : index
      %c0_20 = arith.constant 0 : index
      %c0_21 = arith.constant 0 : index
      %22 = vector.load %arg7[%c0_19, %c0_20, %c0_21] : memref<1x1x128xf32, #tpu.memory_space<vmem>>, vector<1x1x128xf32>
      tpu.vector_store %arg7[%c0_19, %c0_20, %c0_21], %21 {strides = array<i32>} : memref<1x1x128xf32, #tpu.memory_space<vmem>>, vector<1x1x128xf32>,
    } else {
    }
    return
  }
  func.func @transform_0(%arg0: i32, %arg1: i32, %arg2: i32) -> (i32, i32) {
    %c0_i32 = arith.constant 0 : i32
    return %arg0, %arg2 : i32, i32
  }
  func.func @transform_1(%arg0: i32, %arg1: i32, %arg2: i32) -> (i32, i32) {
    %c0_i32 = arith.constant 0 : i32
    return %arg2, %arg1 : i32, i32
  }
  func.func @transform_2(%arg0: i32, %arg1: i32, %arg2: i32) -> (i32, i32) {
    %c0_i32 = arith.constant 0 : i32
    return %arg0, %arg1 : i32, i32
  }
  func.func @transform_3(%arg0: i32, %arg1: i32, %arg2: i32) -> (i32, i32, i32) {
    %c0_i32 = arith.constant 0 : i32
    %c0_i32_0 = arith.constant 0 : i32
    return %arg0, %c0_i32, %arg1 : i32, i32, i32
  }
  func.func @transform_4(%arg0: i32, %arg1: i32, %arg2: i32) -> (i32, i32, i32) {
    %c0_i32 = arith.constant 0 : i32
    %c0_i32_0 = arith.constant 0 : i32
    return %arg0, %c0_i32, %arg1 : i32, i32, i32
  }
}

module attributes {stable_mosaic.version = 11 : i64} {
  func.func @_scale_shift_kernel(%arg0: i32, %arg1: i32, %arg2: memref<128x128xf32, #tpu.memory_space<vmem>>, %arg3: memref<1x128xf32, #tpu.memory_space<vmem>>, %arg4: memref<1x128xf32, #tpu.memory_space<vmem>>, %arg5: memref<128x128xbf16, #tpu.memory_space<vmem>>) attributes {dimension_semantics = [#tpu.dimension_semantics<parallel>, #tpu.dimension_semantics<parallel>], iteration_bounds = array<i64: 1, 1>, scalar_prefetch = 0 : i64, scratch_operands = 0 : i64, tpu.core_type = #tpu.core_type<tc>, window_params = [{transform_indices = @transform_0, window_bounds = array<i64: 128, 128>}, {transform_indices = @transform_1, window_bounds = array<i64: 1, 128>}, {transform_indices = @transform_2, window_bounds = array<i64: 1, 128>}, {transform_indices = @transform_3, window_bounds = array<i64: 128, 128>}]} {
    %c0 = arith.constant 0 : index
    %c0_0 = arith.constant 0 : index
    %0 = vector.load %arg2[%c0, %c0_0] : memref<128x128xf32, #tpu.memory_space<vmem>>, vector<128x128xf32>
    %c0_1 = arith.constant 0 : index
    %c0_2 = arith.constant 0 : index
    %1 = vector.load %arg3[%c0_1, %c0_2] : memref<1x128xf32, #tpu.memory_space<vmem>>, vector<1x128xf32>
    %2 = vector.broadcast %1 : vector<1x128xf32> to vector<128x128xf32>
    %3 = arith.mulf %0, %2 : vector<128x128xf32>
    %c0_3 = arith.constant 0 : index
    %c0_4 = arith.constant 0 : index
    %4 = vector.load %arg4[%c0_3, %c0_4] : memref<1x128xf32, #tpu.memory_space<vmem>>, vector<1x128xf32>
    %5 = vector.broadcast %4 : vector<1x128xf32> to vector<128x128xf32>
    %6 = arith.addf %3, %5 : vector<128x128xf32>
    %cst = arith.constant 0.000000e+00 : f32
    %7 = vector.broadcast %cst : f32 to vector<128x128xf32>
    %8 = arith.maximumf %6, %7 : vector<128x128xf32>
    %9 = arith.truncf %8 : vector<128x128xf32> to vector<128x128xbf16>
    %c0_5 = arith.constant 0 : index
    %c0_6 = arith.constant 0 : index
    %10 = vector.load %arg5[%c0_5, %c0_6] : memref<128x128xbf16, #tpu.memory_space<vmem>>, vector<128x128xbf16>
    tpu.vector_store %arg5[%c0_5, %c0_6], %9 {strides = array<i32>} : memref<128x128xbf16, #tpu.memory_space<vmem>>, vector<128x128xbf16>,
    return
  }
  func.func @transform_0(%arg0: i32, %arg1: i32) -> (i32, i32) {
    %c0_i32 = arith.constant 0 : i32
    return %arg0, %arg1 : i32, i32
  }
  func.func @transform_1(%arg0: i32, %arg1: i32) -> (i32, i32) {
    %c0_i32 = arith.constant 0 : i32
    %c0_i32_0 = arith.constant 0 : i32
    return %c0_i32, %arg1 : i32, i32
  }
  func.func @transform_2(%arg0: i32, %arg1: i32) -> (i32, i32) {
    %c0_i32 = arith.constant 0 : i32
    %c0_i32_0 = arith.constant 0 : i32
    return %c0_i32, %arg1 : i32, i32
  }
  func.func @transform_3(%arg0: i32, %arg1: i32) -> (i32, i32) {
    %c0_i32 = arith.constant 0 : i32
    return %arg0, %arg1 : i32, i32
  }
}

module attributes {stable_mosaic.version = 11 : i64} {
  func.func @_scale_shift_add_relu_kernel(%arg0: i32, %arg1: i32, %arg2: memref<128x128xf32, #tpu.memory_space<vmem>>, %arg3: memref<1x128xf32, #tpu.memory_space<vmem>>, %arg4: memref<1x128xf32, #tpu.memory_space<vmem>>, %arg5: memref<128x128xf32, #tpu.memory_space<vmem>>, %arg6: memref<1x128xf32, #tpu.memory_space<vmem>>, %arg7: memref<1x128xf32, #tpu.memory_space<vmem>>, %arg8: memref<128x128xf32, #tpu.memory_space<vmem>>) attributes {dimension_semantics = [#tpu.dimension_semantics<parallel>, #tpu.dimension_semantics<parallel>], iteration_bounds = array<i64: 1, 1>, scalar_prefetch = 0 : i64, scratch_operands = 0 : i64, tpu.core_type = #tpu.core_type<tc>, window_params = [{transform_indices = @transform_0, window_bounds = array<i64: 128, 128>}, {transform_indices = @transform_1, window_bounds = array<i64: 1, 128>}, {transform_indices = @transform_2, window_bounds = array<i64: 1, 128>}, {transform_indices = @transform_3, window_bounds = array<i64: 128, 128>}, {transform_indices = @transform_4, window_bounds = array<i64: 1, 128>}, {transform_indices = @transform_5, window_bounds = array<i64: 1, 128>}, {transform_indices = @transform_6, window_bounds = array<i64: 128, 128>}]} {
    %c0 = arith.constant 0 : index
    %c0_0 = arith.constant 0 : index
    %0 = vector.load %arg2[%c0, %c0_0] : memref<128x128xf32, #tpu.memory_space<vmem>>, vector<128x128xf32>
    %c0_1 = arith.constant 0 : index
    %c0_2 = arith.constant 0 : index
    %1 = vector.load %arg3[%c0_1, %c0_2] : memref<1x128xf32, #tpu.memory_space<vmem>>, vector<1x128xf32>
    %2 = vector.broadcast %1 : vector<1x128xf32> to vector<128x128xf32>
    %3 = arith.mulf %0, %2 : vector<128x128xf32>
    %c0_3 = arith.constant 0 : index
    %c0_4 = arith.constant 0 : index
    %4 = vector.load %arg4[%c0_3, %c0_4] : memref<1x128xf32, #tpu.memory_space<vmem>>, vector<1x128xf32>
    %5 = vector.broadcast %4 : vector<1x128xf32> to vector<128x128xf32>
    %6 = arith.addf %3, %5 : vector<128x128xf32>
    %c0_5 = arith.constant 0 : index
    %c0_6 = arith.constant 0 : index
    %7 = vector.load %arg5[%c0_5, %c0_6] : memref<128x128xf32, #tpu.memory_space<vmem>>, vector<128x128xf32>
    %c0_7 = arith.constant 0 : index
    %c0_8 = arith.constant 0 : index
    %8 = vector.load %arg6[%c0_7, %c0_8] : memref<1x128xf32, #tpu.memory_space<vmem>>, vector<1x128xf32>
    %9 = vector.broadcast %8 : vector<1x128xf32> to vector<128x128xf32>
    %10 = arith.mulf %7, %9 : vector<128x128xf32>
    %11 = arith.addf %6, %10 : vector<128x128xf32>
    %c0_9 = arith.constant 0 : index
    %c0_10 = arith.constant 0 : index
    %12 = vector.load %arg7[%c0_9, %c0_10] : memref<1x128xf32, #tpu.memory_space<vmem>>, vector<1x128xf32>
    %13 = vector.broadcast %12 : vector<1x128xf32> to vector<128x128xf32>
    %14 = arith.addf %11, %13 : vector<128x128xf32>
    %cst = arith.constant 0.000000e+00 : f32
    %15 = vector.broadcast %cst : f32 to vector<128x128xf32>
    %16 = arith.maximumf %14, %15 : vector<128x128xf32>
    %c0_11 = arith.constant 0 : index
    %c0_12 = arith.constant 0 : index
    %17 = vector.load %arg8[%c0_11, %c0_12] : memref<128x128xf32, #tpu.memory_space<vmem>>, vector<128x128xf32>
    tpu.vector_store %arg8[%c0_11, %c0_12], %16 {strides = array<i32>} : memref<128x128xf32, #tpu.memory_space<vmem>>, vector<128x128xf32>,
    return
  }
  func.func @transform_0(%arg0: i32, %arg1: i32) -> (i32, i32) {
    %c0_i32 = arith.constant 0 : i32
    return %arg0, %arg1 : i32, i32
  }
  func.func @transform_1(%arg0: i32, %arg1: i32) -> (i32, i32) {
    %c0_i32 = arith.constant 0 : i32
    %c0_i32_0 = arith.constant 0 : i32
    return %c0_i32, %arg1 : i32, i32
  }
  func.func @transform_2(%arg0: i32, %arg1: i32) -> (i32, i32) {
    %c0_i32 = arith.constant 0 : i32
    %c0_i32_0 = arith.constant 0 : i32
    return %c0_i32, %arg1 : i32, i32
  }
  func.func @transform_3(%arg0: i32, %arg1: i32) -> (i32, i32) {
    %c0_i32 = arith.constant 0 : i32
    return %arg0, %arg1 : i32, i32
  }
  func.func @transform_4(%arg0: i32, %arg1: i32) -> (i32, i32) {
    %c0_i32 = arith.constant 0 : i32
    %c0_i32_0 = arith.constant 0 : i32
    return %c0_i32, %arg1 : i32, i32
  }
  func.func @transform_5(%arg0: i32, %arg1: i32) -> (i32, i32) {
    %c0_i32 = arith.constant 0 : i32
    %c0_i32_0 = arith.constant 0 : i32
    return %c0_i32, %arg1 : i32, i32
  }
  func.func @transform_6(%arg0: i32, %arg1: i32) -> (i32, i32) {
    %c0_i32 = arith.constant 0 : i32
    return %arg0, %arg1 : i32, i32
  }
}

</mosaic_0001>

<bundles_post_ra>
// kernel: basic_block_forward.6
= control target key start
LH: loop header
LB: loop body
LE: loop exit
PB: predicated region body
PF: predicated region fallthrough
CT: control target
= control target key end

     0   :  { %s391_s0 = inlined_call_operand.vmem [shape: f32[128,128], index: 0, kind: input, shape index: {}]   ;;  %s392_s1 = inlined_call_operand.vmem [shape: f32[1,128], index: 1, kind: input, shape index: {}]   ;;  %s393_s2 = inlined_call_operand.vmem [shape: f32[1,128], index: 2, kind: input, shape index: {}]   ;;  %s394_s3 = inlined_call_operand.vmem [shape: bf16[128,128], index: 3, kind: output, shape index: {}]  }
   0x1   :  { %v14_v0 = vld [vmem:[%s391_s0] sm:$0xff]  ;;  %v15_v1 = vld [vmem:[%s391_s0 + $0x8] sm:$0xff]  ;;  %v16_v6 = vld [vmem:[%s391_s0 + $0x10] sm:$0xff] }
   0x2   :  { %v286_v2 = vld [vmem:[%s392_s1] ss:$0 sm:$0xff]  ;;  %v17_v7 = vld [vmem:[%s391_s0 + $0x18] sm:$0xff]  ;;  %v19_v11 = vld [vmem:[%s391_s0 + $0x28] sm:$0xff] }
   0x3   :  { %v37_v3 = vmul.f32 %v286_v2, %v14_v0  ;;  %v38_v4 = vmul.f32 %v286_v2, %v15_v1  ;;  %v293_v5 = vld [vmem:[%s393_s2] ss:$0 sm:$0xff]  ;;  %v39_v8 = vmul.f32 %v286_v2, %v16_v6  ;;  %v40_v9 = vmul.f32 %v286_v2, %v17_v7  ;;  %v20_v12 = vld [vmem:[%s391_s0 + $0x30] sm:$0xff]  ;;  %v21_v17 = vld [vmem:[%s391_s0 + $0x38] sm:$0xff] }
   0x4   :  { %v18_v10 = vld [vmem:[%s391_s0 + $0x20] sm:$0xff]  ;;  %v42_v16 = vmul.f32 %v286_v2, %v19_v11  ;;  %v43_v20 = vmul.f32 %v286_v2, %v20_v12  ;;  %v44_v21 = vmul.f32 %v286_v2, %v21_v17  ;;  %v23_v27 = vld [vmem:[%s391_s0 + $0x48] sm:$0xff]  ;;  %v24_v32 = vld [vmem:[%s391_s0 + $0x50] sm:$0xff] }
   0x5   :  { %v60_v13 = vadd.f32 %v293_v5, %v37_v3  ;;  %v61_v14 = vadd.f32 %v293_v5, %v38_v4  ;;  %v41_v15 = vmul.f32 %v286_v2, %v18_v10  ;;  %v62_v18 = vadd.f32 %v293_v5, %v39_v8  ;;  %v22_v22 = vld [vmem:[%s391_s0 + $0x40] sm:$0xff]  ;;  %v25_v33 = vld [vmem:[%s391_s0 + $0x58] sm:$0xff]  ;;  %v27_v39 = vld [vmem:[%s391_s0 + $0x68] sm:$0xff] }
   0x6   :  { %v63_v19 = vadd.f32 %v293_v5, %v40_v9  ;;  %v65_v26 = vadd.f32 %v293_v5, %v42_v16  ;;  %v66_v30 = vadd.f32 %v293_v5, %v43_v20  ;;  %v67_v31 = vadd.f32 %v293_v5, %v44_v21  ;;  %v26_v38 = vld [vmem:[%s391_s0 + $0x60] sm:$0xff]  ;;  %v28_v44 = vld [vmem:[%s391_s0 + $0x70] sm:$0xff]  ;;  %v29_v49 = vld [vmem:[%s391_s0 + $0x78] sm:$0xff] }
   0x7   :  { %v76_v23 = vmax.f32 %v60_v13, 0.0  ;;  %v77_v24 = vmax.f32 %v61_v14, 0.0  ;;  %v64_v25 = vadd.f32 %v293_v5, %v41_v15  ;;  %v78_v28 = vmax.f32 %v62_v18, 0.0 }
   0x8   :  { %v79_v29 = vmax.f32 %v63_v19, 0.0  ;;  %v81_v36 = vmax.f32 %v65_v26, 0.0  ;;  %v45_v37 = vmul.f32 %v286_v2, %v22_v22  ;;  %v82_v41 = vmax.f32 %v66_v30, 0.0 }
   0x9   :  { %v213_v34 = vpack.c.bf16 %v77_v24, %v76_v23  ;;  %v80_v35 = vmax.f32 %v64_v25, 0.0  ;;  %v83_v42 = vmax.f32 %v67_v31, 0.0  ;;  %v46_v43 = vmul.f32 %v286_v2, %v23_v27 }
   0xa   :  { %v218_v40 = vpack.c.bf16 %v79_v29, %v78_v28  ;;  %v68_v46 = vadd.f32 %v293_v5, %v45_v37  ;;  %v47_v47 = vmul.f32 %v286_v2, %v24_v32  ;;  %v48_v48 = vmul.f32 %v286_v2, %v25_v33 }
   0xb   :  { %214 = vst [vmem:[%s394_s3] sm:$0xff] %v213_v34   ;;  %v223_v45 = vpack.c.bf16 %v81_v36, %v80_v35  ;;  %v228_v50 = vpack.c.bf16 %v83_v42, %v82_v41  ;;  %v69_v51 = vadd.f32 %v293_v5, %v46_v43  ;;  %v49_v52 = vmul.f32 %v286_v2, %v26_v38 }
   0xc   :  { %250 = vst [vmem:[%s394_s3 + $0x8] sm:$0xff] %v218_v40   ;;  %v50_v53 = vmul.f32 %v286_v2, %v27_v39  ;;  %v84_v54 = vmax.f32 %v68_v46, 0.0  ;;  %v70_v55 = vadd.f32 %v293_v5, %v47_v47  ;;  %v71_v56 = vadd.f32 %v293_v5, %v48_v48 }
   0xd   :  { %251 = vst [vmem:[%s394_s3 + $0x10] sm:$0xff] %v223_v45   ;;  %v51_v57 = vmul.f32 %v286_v2, %v28_v44  ;;  %252 = vst [vmem:[%s394_s3 + $0x18] sm:$0xff] %v228_v50   ;;  %v85_v58 = vmax.f32 %v69_v51, 0.0  ;;  %v72_v59 = vadd.f32 %v293_v5, %v49_v52  ;;  %v52_v61 = vmul.f32 %v286_v2, %v29_v49 }
   0xe   :  { %v73_v60 = vadd.f32 %v293_v5, %v50_v53  ;;  %v86_v62 = vmax.f32 %v70_v55, 0.0  ;;  %v87_v63 = vmax.f32 %v71_v56, 0.0 }
   0xf   :  { %v74_v0 = vadd.f32 %v293_v5, %v51_v57  ;;  %v233_v1 = vpack.c.bf16 %v85_v58, %v84_v54  ;;  %v88_v3 = vmax.f32 %v72_v59, 0.0  ;;  %v75_v6 = vadd.f32 %v293_v5, %v52_v61 }
  0x10   :  { %v89_v4 = vmax.f32 %v73_v60, 0.0  ;;  %v238_v7 = vpack.c.bf16 %v87_v63, %v86_v62 }
  0x11   :  { %v90_v8 = vmax.f32 %v74_v0, 0.0  ;;  %253 = vst [vmem:[%s394_s3 + $0x20] sm:$0xff] %v233_v1   ;;  %v91_v10 = vmax.f32 %v75_v6, 0.0 }
  0x12   :  { %v243_v9 = vpack.c.bf16 %v89_v4, %v88_v3  ;;  %254 = vst [vmem:[%s394_s3 + $0x28] sm:$0xff] %v238_v7  }
  0x13   :  { %v248_v2 = vpack.c.bf16 %v91_v10, %v90_v8 }
  0x14   :  { %255 = vst [vmem:[%s394_s3 + $0x30] sm:$0xff] %v243_v9  }
  0x15   :  { %256 = vst [vmem:[%s394_s3 + $0x38] sm:$0xff] %v248_v2  }

// kernel: basic_block_forward.5
= control target key start
LH: loop header
LB: loop body
LE: loop exit
PB: predicated region body
PF: predicated region fallthrough
CT: control target
= control target key end

     0   :  { %s638_s1 = inlined_call_operand.vmem [shape: bf16[128,128], index: 1, kind: input, shape index: {}]   ;;  %s639_s0 = inlined_call_operand.vmem [shape: bf16[128,128], index: 0, kind: input, shape index: {}]   ;;  %s640_s2 = inlined_call_operand.vmem [shape: f32[128,128], index: 2, kind: output, shape index: {0}]   ;;  %s641_s3 = inlined_call_operand.vmem [shape: f32[1,1,128], index: 3, kind: output, shape index: {1}]   ;;  %s642_s4 = inlined_call_operand.vmem [shape: f32[1,1,128], index: 4, kind: output, shape index: {2}]  }
   0x1   :  { %v495_v0 = vld [vmem:[%s638_s1 + $0x38] sm:$0xff]   ;;  %v496_v1 = vld [vmem:[%s638_s1 + $0x30] sm:$0xff]   ;;  %v497_v2 = vld [vmem:[%s638_s1 + $0x28] sm:$0xff]  }
   0x2   :  { %447 = vmatprep.subr.bf16.mxu0 %v495_v0  ;;  %479 = vmatprep.subr.bf16.mxu1 %v495_v0  ;;  %v498_v3 = vld [vmem:[%s638_s1 + $0x20] sm:$0xff]   ;;  %v499_v5 = vld [vmem:[%s638_s1 + $0x18] sm:$0xff]   ;;  %v500_v7 = vld [vmem:[%s638_s1 + $0x10] sm:$0xff]  }
   0x3   :  { %448 = vmatpush3.bf16.msra.mxu0 %v495_v0  ;;  %487 = vmatpush3.bf16.msra.mxu1 %v495_v0  ;;  %v503_v4 = vld [vmem:[%s639_s0] sm:$0xff]   ;;  %v501_v8 = vld [vmem:[%s638_s1 + $0x8] sm:$0xff]   ;;  %v505_v12 = vld [vmem:[%s639_s0 + $0x10] sm:$0xff]  }
   0x4   :  { %449 = vmatprep.subr.bf16.mxu0 %v496_v1  ;;  %480 = vmatprep.subr.bf16.mxu1 %v496_v1  ;;  %v507_v6 = vld [vmem:[%s639_s0 + $0x20] sm:$0xff]   ;;  %v504_v10 = vld [vmem:[%s639_s0 + $0x8] sm:$0xff]   ;;  %v509_v13 = vld [vmem:[%s639_s0 + $0x30] sm:$0xff]  }
   0x5   :  { %463 = vmatprep.mubr.bf16.mxu0 %v503_v4  ;;  %471 = vmatprep.mubr.bf16.mxu1 %v507_v6  ;;  %v502_v9 = vld [vmem:[%s638_s1] sm:$0xff]   ;;  %v508_v11 = vld [vmem:[%s639_s0 + $0x28] sm:$0xff]   ;;  %v506_v14 = vld [vmem:[%s639_s0 + $0x18] sm:$0xff]  }
   0x6   :  { %v510_v15 = vld [vmem:[%s639_s0 + $0x38] sm:$0xff]  }
   0x7   :  { %450 = vmatpush3.bf16.msra.mxu0 %v496_v1  ;;  %488 = vmatpush3.bf16.msra.mxu1 %v496_v1 }
   0x8   :  { %451 = vmatprep.subr.bf16.mxu0 %v497_v2  ;;  %481 = vmatprep.subr.bf16.mxu1 %v497_v2 }
   0xb   :  { %452 = vmatpush3.bf16.msra.mxu0 %v497_v2  ;;  %489 = vmatpush3.bf16.msra.mxu1 %v497_v2 }
   0xc   :  { %453 = vmatprep.subr.bf16.mxu0 %v498_v3  ;;  %482 = vmatprep.subr.bf16.mxu1 %v498_v3 }
   0xf   :  { %454 = vmatpush3.bf16.msra.mxu0 %v498_v3  ;;  %490 = vmatpush3.bf16.msra.mxu1 %v498_v3 }
  0x10   :  { %455 = vmatprep.subr.bf16.mxu0 %v499_v5  ;;  %483 = vmatprep.subr.bf16.mxu1 %v499_v5 }
  0x13   :  { %456 = vmatpush3.bf16.msra.mxu0 %v499_v5  ;;  %491 = vmatpush3.bf16.msra.mxu1 %v499_v5 }
  0x14   :  { %457 = vmatprep.subr.bf16.mxu0 %v500_v7  ;;  %484 = vmatprep.subr.bf16.mxu1 %v500_v7 }
  0x17   :  { %458 = vmatpush3.bf16.msra.mxu0 %v500_v7  ;;  %492 = vmatpush3.bf16.msra.mxu1 %v500_v7 }
  0x18   :  { %459 = vmatprep.subr.bf16.mxu0 %v501_v8  ;;  %485 = vmatprep.subr.bf16.mxu1 %v501_v8 }
  0x1b   :  { %460 = vmatpush3.bf16.msra.mxu0 %v501_v8  ;;  %493 = vmatpush3.bf16.msra.mxu1 %v501_v8 }
  0x1c   :  { %461 = vmatprep.subr.bf16.mxu0 %v502_v9  ;;  %486 = vmatprep.subr.bf16.mxu1 %v502_v9 }
  0x1f   :  { %462 = vmatpush3.bf16.msra.mxu0 %v502_v9  ;;  %494 = vmatpush3.bf16.msra.mxu1 %v502_v9 }
  0x22   :  { %464 = vmatmul.mubr.bf16.vlgmr.msra.gmra.mxu0 %v504_v10  ;;  %472 = vmatmul.mubr.bf16.vlgmr.msra.gmra.mxu1 %v508_v11 }
  0x23   :  { %467 = vmatprep.mubr.bf16.mxu0 %v505_v12  ;;  %475 = vmatprep.mubr.bf16.mxu1 %v509_v13 }
  0x2a   :  { %468 = vmatmul.mubr.bf16.gmra.mxu0 %v506_v14  ;;  %476 = vmatmul.mubr.bf16.gmra.mxu1 %v510_v15 }
  0xe2   :  { %v465_v16 = vpop.f32.mrf.mxu0  ;;  %v473_v17 = vpop.f32.mrf.mxu1 }
  0xe3   :  { %329 = vst [vmem:[%s640_s2 + $0x10] sm:$0xff] %v465_v16  ;;  %337 = vst [vmem:[%s640_s2 + $0x50] sm:$0xff] %v473_v17  ;;  %v367_v29 = vmul.f32 %v465_v16, %v465_v16  ;;  %v375_v59 = vmul.f32 %v473_v17, %v473_v17 }
  0xe4   :  { %v213_v18 = vpop.f32.mrf.mxu0  ;;  %v245_v19 = vpop.f32.mrf.mxu1 }
  0xe5   :  { %327 = vst [vmem:[%s640_s2] sm:$0xff] %v213_v18  ;;  %335 = vst [vmem:[%s640_s2 + $0x40] sm:$0xff] %v245_v19  ;;  %v365_v24 = vmul.f32 %v213_v18, %v213_v18  ;;  %v373_v53 = vmul.f32 %v245_v19, %v245_v19 }
  0xe6   :  { %v466_v20 = vpop.f32.mrf.mxu0  ;;  %v474_v21 = vpop.f32.mrf.mxu1 }
  0xe7   :  { %330 = vst [vmem:[%s640_s2 + $0x18] sm:$0xff] %v466_v20  ;;  %338 = vst [vmem:[%s640_s2 + $0x58] sm:$0xff] %v474_v21  ;;  %v368_v34 = vmul.f32 %v466_v20, %v466_v20  ;;  %v376_v62 = vmul.f32 %v474_v21, %v474_v21 }
  0xe8   :  { %v216_v22 = vpop.f32.mrf.mxu0  ;;  %v248_v23 = vpop.f32.mrf.mxu1 }
  0xe9   :  { %328 = vst [vmem:[%s640_s2 + $0x8] sm:$0xff] %v216_v22  ;;  %v343_v25 = vadd.f32 %v216_v22, %v213_v18  ;;  %v366_v26 = vmul.f32 %v216_v22, %v216_v22  ;;  %336 = vst [vmem:[%s640_s2 + $0x48] sm:$0xff] %v248_v23  ;;  %v374_v57 = vmul.f32 %v248_v23, %v248_v23 }
  0xea   :  { %v469_v27 = vpop.f32.mrf.mxu0  ;;  %v477_v28 = vpop.f32.mrf.mxu1 }
  0xeb   :  { %v344_v30 = vadd.f32 %v465_v16, %v343_v25  ;;  %v381_v31 = vadd.f32 %v366_v26, %v365_v24  ;;  %333 = vst [vmem:[%s640_s2 + $0x30] sm:$0xff] %v469_v27  ;;  %341 = vst [vmem:[%s640_s2 + $0x70] sm:$0xff] %v477_v28  ;;  %v371_v47 = vmul.f32 %v469_v27, %v469_v27 }
  0xec   :  { %v229_v32 = vpop.f32.mrf.mxu0  ;;  %v261_v33 = vpop.f32.mrf.mxu1  ;;  %v379_v7 = vmul.f32 %v477_v28, %v477_v28 }
  0xed   :  { %v382_v35 = vadd.f32 %v381_v31, %v367_v29  ;;  %331 = vst [vmem:[%s640_s2 + $0x20] sm:$0xff] %v229_v32  ;;  %v345_v36 = vadd.f32 %v466_v20, %v344_v30  ;;  %339 = vst [vmem:[%s640_s2 + $0x60] sm:$0xff] %v261_v33  ;;  %v369_v40 = vmul.f32 %v229_v32, %v229_v32 }
  0xee   :  { %v470_v37 = vpop.f32.mrf.mxu0  ;;  %v478_v38 = vpop.f32.mrf.mxu1  ;;  %v377_v2 = vmul.f32 %v261_v33, %v261_v33 }
  0xef   :  { %v346_v39 = vadd.f32 %v345_v36, %v229_v32  ;;  %v383_v41 = vadd.f32 %v382_v35, %v368_v34  ;;  %334 = vst [vmem:[%s640_s2 + $0x38] sm:$0xff] %v470_v37  ;;  %342 = vst [vmem:[%s640_s2 + $0x78] sm:$0xff] %v478_v38  ;;  %v372_v50 = vmul.f32 %v470_v37, %v470_v37 }
  0xf0   :  { %v232_v42 = vpop.f32.mrf.mxu0  ;;  %v264_v43 = vpop.f32.mrf.mxu1  ;;  %v380_v10 = vmul.f32 %v478_v38, %v478_v38 }
  0xf1   :  { %v384_v44 = vadd.f32 %v383_v41, %v369_v40  ;;  %332 = vst [vmem:[%s640_s2 + $0x28] sm:$0xff] %v232_v42  ;;  %v347_v45 = vadd.f32 %v346_v39, %v232_v42  ;;  %v370_v46 = vmul.f32 %v232_v42, %v232_v42  ;;  %340 = vst [vmem:[%s640_s2 + $0x68] sm:$0xff] %v264_v43 }
  0xf2   :  { %v378_v6 = vmul.f32 %v264_v43, %v264_v43 }
  0xf3   :  { %v348_v48 = vadd.f32 %v469_v27, %v347_v45  ;;  %v385_v49 = vadd.f32 %v384_v44, %v370_v46 }
  0xf5   :  { %v349_v51 = vadd.f32 %v470_v37, %v348_v48  ;;  %v386_v52 = vadd.f32 %v385_v49, %v371_v47 }
  0xf7   :  { %v387_v54 = vadd.f32 %v386_v52, %v372_v50  ;;  %v350_v55 = vadd.f32 %v349_v51, %v245_v19 }
  0xf9   :  { %v351_v56 = vadd.f32 %v350_v55, %v248_v23  ;;  %v388_v58 = vadd.f32 %v387_v54, %v373_v53 }
  0xfb   :  { %v352_v60 = vadd.f32 %v473_v17, %v351_v56  ;;  %v389_v61 = vadd.f32 %v388_v58, %v374_v57 }
  0xfd   :  { %v390_v63 = vadd.f32 %v389_v61, %v375_v59  ;;  %v353_v0 = vadd.f32 %v474_v21, %v352_v60 }
  0xff   :  { %v354_v1 = vadd.f32 %v353_v0, %v261_v33  ;;  %v391_v3 = vadd.f32 %v390_v63, %v376_v62 }
 0x101   :  { %v392_v4 = vadd.f32 %v391_v3, %v377_v2  ;;  %v355_v5 = vadd.f32 %v354_v1, %v264_v43 }
 0x103   :  { %v356_v8 = vadd.f32 %v477_v28, %v355_v5  ;;  %v393_v9 = vadd.f32 %v392_v4, %v378_v6 }
 0x105   :  { %v357_v11 = vadd.f32 %v478_v38, %v356_v8  ;;  %v394_v12 = vadd.f32 %v393_v9, %v379_v7 }
 0x107   :  { %v358_v13 = vrot.slane %v357_v11, 4  ;;  %v395_v14 = vadd.f32 %v394_v12, %v380_v10 }
 0x109   :  { %v359_v15 = vadd.f32 %v358_v13, %v357_v11  ;;  %v396_v16 = vrot.slane %v395_v14, 4 }
 0x10b   :  { %v360_v17 = vrot.slane %v359_v15, 2  ;;  %v397_v18 = vadd.f32 %v396_v16, %v395_v14 }
 0x10d   :  { %v361_v19 = vadd.f32 %v360_v17, %v359_v15  ;;  %v398_v20 = vrot.slane %v397_v18, 2 }
 0x10f   :  { %v362_v21 = vrot.slane %v361_v19, 1  ;;  %v399_v22 = vadd.f32 %v398_v20, %v397_v18 }
 0x111   :  { %v363_v23 = vadd.f32 %v362_v21, %v361_v19  ;;  %v400_v24 = vrot.slane %v399_v22, 1 }
 0x113   :  { %364 = vst [vmem:[%s641_s3] sm:$0x1] %v363_v23  ;;  %v401_v25 = vadd.f32 %v400_v24, %v399_v22 }
 0x115   :  { %402 = vst [vmem:[%s642_s4] sm:$0x1] %v401_v25 }

// kernel: basic_block_forward.9
= control target key start
LH: loop header
LB: loop body
LE: loop exit
PB: predicated region body
PF: predicated region fallthrough
CT: control target
= control target key end

     0   :  { %s466_s0 = inlined_call_operand.vmem [shape: f32[128,128], index: 0, kind: input, shape index: {}]   ;;  %s467_s1 = inlined_call_operand.vmem [shape: f32[1,128], index: 1, kind: input, shape index: {}]   ;;  %s468_s2 = inlined_call_operand.vmem [shape: f32[1,128], index: 2, kind: input, shape index: {}]   ;;  %s469_s3 = inlined_call_operand.vmem [shape: f32[128,128], index: 3, kind: input, shape index: {}]   ;;  %s470_s4 = inlined_call_operand.vmem [shape: f32[1,128], index: 4, kind: input, shape index: {}]   ;;  %s471_s5 = inlined_call_operand.vmem [shape: f32[1,128], index: 5, kind: input, shape index: {}]   ;;  %s472_s6 = inlined_call_operand.vmem [shape: f32[128,128], index: 6, kind: output, shape index: {}]  }
   0x1   :  { %v23_v0 = vld [vmem:[%s466_s0] sm:$0xff]  ;;  %v24_v8 = vld [vmem:[%s466_s0 + $0x8] sm:$0xff]  ;;  %v25_v10 = vld [vmem:[%s466_s0 + $0x10] sm:$0xff] }
   0x2   :  { %v244_v1 = vld [vmem:[%s467_s1] ss:$0 sm:$0xff]  ;;  %v86_v9 = vld [vmem:[%s469_s3 + $0x8] sm:$0xff]  ;;  %v87_v15 = vld [vmem:[%s469_s3 + $0x10] sm:$0xff] }
   0x3   :  { %v249_v2 = vld [vmem:[%s468_s2] ss:$0 sm:$0xff]  ;;  %v46_v3 = vmul.f32 %v244_v1, %v23_v0  ;;  %v47_v12 = vmul.f32 %v244_v1, %v24_v8  ;;  %v48_v14 = vmul.f32 %v244_v1, %v25_v10  ;;  %v26_v16 = vld [vmem:[%s466_s0 + $0x18] sm:$0xff]  ;;  %v28_v23 = vld [vmem:[%s466_s0 + $0x28] sm:$0xff] }
   0x4   :  { %v85_v4 = vld [vmem:[%s469_s3] sm:$0xff]  ;;  %v88_v17 = vld [vmem:[%s469_s3 + $0x18] sm:$0xff]  ;;  %v49_v19 = vmul.f32 %v244_v1, %v26_v16  ;;  %v90_v28 = vld [vmem:[%s469_s3 + $0x28] sm:$0xff]  ;;  %v51_v33 = vmul.f32 %v244_v1, %v28_v23 }
   0x5   :  { %v258_v5 = vld [vmem:[%s470_s4] ss:$0 sm:$0xff]  ;;  %v69_v11 = vadd.f32 %v249_v2, %v46_v3  ;;  %v70_v25 = vadd.f32 %v249_v2, %v47_v12  ;;  %v71_v26 = vadd.f32 %v249_v2, %v48_v14  ;;  %v29_v29 = vld [vmem:[%s466_s0 + $0x30] sm:$0xff]  ;;  %v30_v39 = vld [vmem:[%s466_s0 + $0x38] sm:$0xff] }
   0x6   :  { %v108_v6 = vmul.f32 %v258_v5, %v85_v4  ;;  %v264_v7 = vld [vmem:[%s471_s5] ss:$0 sm:$0xff]  ;;  %v109_v13 = vmul.f32 %v258_v5, %v86_v9  ;;  %v110_v18 = vmul.f32 %v258_v5, %v87_v15  ;;  %v111_v20 = vmul.f32 %v258_v5, %v88_v17  ;;  %v91_v30 = vld [vmem:[%s469_s3 + $0x30] sm:$0xff]  ;;  %v92_v44 = vld [vmem:[%s469_s3 + $0x38] sm:$0xff] }
   0x7   :  { %v27_v21 = vld [vmem:[%s466_s0 + $0x20] sm:$0xff]  ;;  %v72_v31 = vadd.f32 %v249_v2, %v49_v19  ;;  %v113_v34 = vmul.f32 %v258_v5, %v90_v28  ;;  %v74_v41 = vadd.f32 %v249_v2, %v51_v33  ;;  %v52_v42 = vmul.f32 %v244_v1, %v29_v29  ;;  %v32_v55 = vld [vmem:[%s466_s0 + $0x48] sm:$0xff]  ;;  %v33_v3 = vld [vmem:[%s466_s0 + $0x50] sm:$0xff] }
   0x8   :  { %v89_v22 = vld [vmem:[%s469_s3 + $0x20] sm:$0xff]  ;;  %v124_v24 = vadd.f32 %v108_v6, %v69_v11  ;;  %v50_v27 = vmul.f32 %v244_v1, %v27_v21  ;;  %v125_v36 = vadd.f32 %v109_v13, %v70_v25  ;;  %v126_v37 = vadd.f32 %v110_v18, %v71_v26  ;;  %v94_v60 = vld [vmem:[%s469_s3 + $0x48] sm:$0xff]  ;;  %v95_v4 = vld [vmem:[%s469_s3 + $0x50] sm:$0xff] }
   0x9   :  { %v112_v32 = vmul.f32 %v258_v5, %v89_v22  ;;  %v127_v40 = vadd.f32 %v111_v20, %v72_v31  ;;  %v114_v43 = vmul.f32 %v258_v5, %v91_v30  ;;  %v129_v50 = vadd.f32 %v113_v34, %v74_v41  ;;  %v31_v53 = vld [vmem:[%s466_s0 + $0x40] sm:$0xff]  ;;  %v34_v11 = vld [vmem:[%s466_s0 + $0x58] sm:$0xff]  ;;  %v36_v23 = vld [vmem:[%s466_s0 + $0x68] sm:$0xff] }
   0xa   :  { %v147_v35 = vadd.f32 %v264_v7, %v124_v24  ;;  %v73_v38 = vadd.f32 %v249_v2, %v50_v27  ;;  %v148_v46 = vadd.f32 %v264_v7, %v125_v36  ;;  %v149_v47 = vadd.f32 %v264_v7, %v126_v37  ;;  %v93_v54 = vld [vmem:[%s469_s3 + $0x40] sm:$0xff]  ;;  %v96_v12 = vld [vmem:[%s469_s3 + $0x58] sm:$0xff]  ;;  %v37_v33 = vld [vmem:[%s466_s0 + $0x70] sm:$0xff] }
   0xb   :  { %v150_v49 = vadd.f32 %v264_v7, %v127_v40  ;;  %v75_v51 = vadd.f32 %v249_v2, %v52_v42  ;;  %v53_v52 = vmul.f32 %v244_v1, %v30_v39  ;;  %v115_v59 = vmul.f32 %v258_v5, %v92_v44  ;;  %v35_v17 = vld [vmem:[%s466_s0 + $0x60] sm:$0xff]  ;;  %v99_v42 = vld [vmem:[%s469_s3 + $0x70] sm:$0xff] }
   0xc   :  { %v163_v45 = vmax.f32 %v147_v35, 0.0  ;;  %v128_v48 = vadd.f32 %v112_v32, %v73_v38  ;;  %v164_v56 = vmax.f32 %v148_v46, 0.0  ;;  %v165_v57 = vmax.f32 %v149_v47, 0.0  ;;  %v97_v22 = vld [vmem:[%s469_s3 + $0x60] sm:$0xff]  ;;  %v98_v32 = vld [vmem:[%s469_s3 + $0x68] sm:$0xff]  ;;  %v38_v47 = vld [vmem:[%s466_s0 + $0x78] sm:$0xff] }
   0xd   :  { %v166_v61 = vmax.f32 %v150_v49, 0.0  ;;  %v152_v62 = vadd.f32 %v264_v7, %v129_v50  ;;  %v130_v63 = vadd.f32 %v114_v43, %v75_v51  ;;  %v76_v0 = vadd.f32 %v249_v2, %v53_v52 }
   0xe   :  { %179 = vst [vmem:[%s472_s6] sm:$0xff] %v163_v45  ;;  %v151_v58 = vadd.f32 %v264_v7, %v128_v48  ;;  %180 = vst [vmem:[%s472_s6 + $0x8] sm:$0xff] %v164_v56  ;;  %v54_v8 = vmul.f32 %v244_v1, %v31_v53  ;;  %v116_v9 = vmul.f32 %v258_v5, %v93_v54  ;;  %v100_v48 = vld [vmem:[%s469_s3 + $0x78] sm:$0xff] }
   0xf   :  { %181 = vst [vmem:[%s472_s6 + $0x10] sm:$0xff] %v165_v57  ;;  %v55_v10 = vmul.f32 %v244_v1, %v32_v55  ;;  %182 = vst [vmem:[%s472_s6 + $0x18] sm:$0xff] %v166_v61  ;;  %v168_v13 = vmax.f32 %v152_v62, 0.0  ;;  %v153_v14 = vadd.f32 %v264_v7, %v130_v63  ;;  %v131_v15 = vadd.f32 %v115_v59, %v76_v0 }
  0x10   :  { %v167_v6 = vmax.f32 %v151_v58, 0.0  ;;  %v117_v16 = vmul.f32 %v258_v5, %v94_v60  ;;  %v77_v18 = vadd.f32 %v249_v2, %v54_v8  ;;  %v56_v20 = vmul.f32 %v244_v1, %v33_v3 }
  0x11   :  { %v78_v19 = vadd.f32 %v249_v2, %v55_v10  ;;  %v118_v21 = vmul.f32 %v258_v5, %v95_v4  ;;  %184 = vst [vmem:[%s472_s6 + $0x28] sm:$0xff] %v168_v13  ;;  %v169_v24 = vmax.f32 %v153_v14, 0.0  ;;  %v154_v25 = vadd.f32 %v264_v7, %v131_v15 }
  0x12   :  { %183 = vst [vmem:[%s472_s6 + $0x20] sm:$0xff] %v167_v6  ;;  %v57_v26 = vmul.f32 %v244_v1, %v34_v11  ;;  %v119_v27 = vmul.f32 %v258_v5, %v96_v12  ;;  %v132_v28 = vadd.f32 %v116_v9, %v77_v18  ;;  %v79_v30 = vadd.f32 %v249_v2, %v56_v20 }
  0x13   :  { %v133_v29 = vadd.f32 %v117_v16, %v78_v19  ;;  %v58_v31 = vmul.f32 %v244_v1, %v35_v17  ;;  %185 = vst [vmem:[%s472_s6 + $0x30] sm:$0xff] %v169_v24  ;;  %v170_v34 = vmax.f32 %v154_v25, 0.0  ;;  %v120_v36 = vmul.f32 %v258_v5, %v97_v22 }
  0x14   :  { %v80_v35 = vadd.f32 %v249_v2, %v57_v26  ;;  %v59_v37 = vmul.f32 %v244_v1, %v36_v23  ;;  %v155_v38 = vadd.f32 %v264_v7, %v132_v28  ;;  %v134_v40 = vadd.f32 %v118_v21, %v79_v30 }
  0x15   :  { %v156_v39 = vadd.f32 %v264_v7, %v133_v29  ;;  %v81_v41 = vadd.f32 %v249_v2, %v58_v31  ;;  %186 = vst [vmem:[%s472_s6 + $0x38] sm:$0xff] %v170_v34  ;;  %v121_v45 = vmul.f32 %v258_v5, %v98_v32  ;;  %v60_v46 = vmul.f32 %v244_v1, %v37_v33 }
  0x16   :  { %v135_v43 = vadd.f32 %v119_v27, %v80_v35  ;;  %v82_v44 = vadd.f32 %v249_v2, %v59_v37  ;;  %v171_v49 = vmax.f32 %v155_v38, 0.0  ;;  %v157_v51 = vadd.f32 %v264_v7, %v134_v40 }
  0x17   :  { %v172_v50 = vmax.f32 %v156_v39, 0.0  ;;  %v136_v52 = vadd.f32 %v120_v36, %v81_v41  ;;  %v83_v55 = vadd.f32 %v249_v2, %v60_v46  ;;  %v122_v56 = vmul.f32 %v258_v5, %v99_v42 }
  0x18   :  { %v158_v53 = vadd.f32 %v264_v7, %v135_v43  ;;  %v137_v54 = vadd.f32 %v121_v45, %v82_v44  ;;  %187 = vst [vmem:[%s472_s6 + $0x40] sm:$0xff] %v171_v49  ;;  %v173_v57 = vmax.f32 %v157_v51, 0.0  ;;  %v61_v59 = vmul.f32 %v244_v1, %v38_v47 }
  0x19   :  { %188 = vst [vmem:[%s472_s6 + $0x48] sm:$0xff] %v172_v50  ;;  %v159_v58 = vadd.f32 %v264_v7, %v136_v52  ;;  %v123_v60 = vmul.f32 %v258_v5, %v100_v48  ;;  %v138_v63 = vadd.f32 %v122_v56, %v83_v55 }
  0x1a   :  { %v174_v61 = vmax.f32 %v158_v53, 0.0  ;;  %v160_v62 = vadd.f32 %v264_v7, %v137_v54  ;;  %189 = vst [vmem:[%s472_s6 + $0x50] sm:$0xff] %v173_v57  ;;  %v84_v3 = vadd.f32 %v249_v2, %v61_v59 }
  0x1b   :  { %v175_v0 = vmax.f32 %v159_v58, 0.0  ;;  %v161_v1 = vadd.f32 %v264_v7, %v138_v63 }
  0x1c   :  { %190 = vst [vmem:[%s472_s6 + $0x58] sm:$0xff] %v174_v61  ;;  %v176_v4 = vmax.f32 %v160_v62, 0.0  ;;  %v139_v5 = vadd.f32 %v123_v60, %v84_v3 }
  0x1d   :  { %191 = vst [vmem:[%s472_s6 + $0x60] sm:$0xff] %v175_v0  ;;  %v177_v6 = vmax.f32 %v161_v1, 0.0 }
  0x1e   :  { %192 = vst [vmem:[%s472_s6 + $0x68] sm:$0xff] %v176_v4  ;;  %v162_v8 = vadd.f32 %v264_v7, %v139_v5 }
  0x1f   :  { %193 = vst [vmem:[%s472_s6 + $0x70] sm:$0xff] %v177_v6 }
  0x20   :  { %v178_v2 = vmax.f32 %v162_v8, 0.0 }
  0x22   :  { %194 = vst [vmem:[%s472_s6 + $0x78] sm:$0xff] %v178_v2 }

</bundles_post_ra>
